<compile_context>
chip_gen: v5e
topology: v5e:2x2
jax: 0.10.0
libtpu: 0.0.40
codegen_flags: <defaults>
</compile_context>

<pallas_src>
import jax
import jax.numpy as jnp
from jax.experimental import pallas as pl
from jax.experimental.pallas import tpu as pltpu

H1 = 128          # hidden_dim1 (already lane-aligned)
H2_PAD = 128      # hidden_dim2 (64) zero-padded to a full lane width
C_MM = 128        # class dim padded to 128 for a lane-dense MXU matmul
C_SM = 8          # lanes actually used for softmax / output (output_dim <= 8)
NEG_BIG = -1e30   # f32 bias for padded class lanes -> exactly 0 probability


def mlp_kernel(x_ref, w1_ref, b1_ref, w2_ref, b2_ref, w3_ref, b3_ref, o_ref):
    # Cast x in-kernel (VPU) so only the f32 x is DMA'd from HBM once.
    x = x_ref[...].astype(jnp.bfloat16)

    # Layer 1: Linear + ReLU (bf16 MXU matmul, f32 accumulate, f32 elementwise)
    h1 = jnp.dot(x, w1_ref[...], preferred_element_type=jnp.float32)
    h1 = jnp.maximum(h1 + b1_ref[...], 0.0)

    # Layer 2: Linear + ReLU (padded hidden units are exactly 0 after ReLU)
    h2 = jnp.dot(h1.astype(jnp.bfloat16), w2_ref[...],
                 preferred_element_type=jnp.float32)
    h2 = jnp.maximum(h2 + b2_ref[...], 0.0)

    # Layer 3: Linear with lane-dense N=128 (padded class lanes: -1e30 bias).
    logits = jnp.dot(h2.astype(jnp.bfloat16), w3_ref[...],
                     preferred_element_type=jnp.float32)
    logits = logits + b3_ref[...]

    # Narrow, exact softmax over the first C_SM lanes only (real classes live
    # in lanes [0, output_dim); padded lanes underflow to exactly 0).
    lg = logits[:, :C_SM]
    m = jnp.max(lg, axis=-1, keepdims=True)
    e = jnp.exp(lg - m)
    s = jnp.sum(e, axis=-1, keepdims=True)
    o_ref[...] = (e / s).astype(o_ref.dtype)


def _round_up(x, m):
    return (x + m - 1) // m * m


def mlp_classifier_forward(x, kernel_params, *, output_dim=2, tile_b=1024):
    """x: [B, D] float32; kernel_params: padded params from pad_params_for_kernel."""
    w1, b1, w2, b2, w3, b3 = kernel_params
    B, D = x.shape
    assert output_dim <= C_SM

    # --- batch tile selection ------------------------------------------------
    # Big tiles amortize the ~0.35 us per-grid-step overhead (>=512 rows is
    # near the HBM roofline); clamp for small batches.
    tile_b = max(8, min(tile_b, _round_up(max(B, 1), 8)))
    # Keep the double-buffered f32 x tile within a conservative VMEM budget
    # (matters only for very large D; respects v5e's 16 MiB default scope).
    while tile_b > 128 and 2 * tile_b * D * 4 > (8 << 20):
        tile_b //= 2
    # v7x has 2 TensorCores sharing the "parallel" batch axis: keep >=2 grid
    # steps when the batch is big enough to split (neutral on v5e/v6e).
    if B >= 512 and _round_up(B, tile_b) < 2 * tile_b:
        tile_b = max(256, _round_up(_round_up(B, 8) // 2, 256))

    b_pad = _round_up(B, tile_b)
    if b_pad != B:
        x = jnp.pad(x, ((0, b_pad - B), (0, 0)))

    grid = (b_pad // tile_b,)

    # --- VMEM / cost bookkeeping --------------------------------------------
    weight_bytes = sum(int(p.size) * p.dtype.itemsize for p in kernel_params)
    x_tile_bytes = 2 * tile_b * D * 4                 # double-buffered f32 x
    out_tile_bytes = 2 * tile_b * C_SM * 4
    interm_bytes = 4 * tile_b * (H1 + H2_PAD + C_MM) * 4   # headroom for temps
    vmem_needed = (weight_bytes + x_tile_bytes + out_tile_bytes
                   + interm_bytes + (2 << 20))
    vmem_limit = int(min(48 << 20, max(16 << 20, vmem_needed)))

    flops = 2 * b_pad * (D * H1 + H1 * H2_PAD + H2_PAD * C_MM)
    bytes_accessed = (
        b_pad * D * 4          # x (f32, read once)
        + weight_bytes         # resident weights/biases
        + b_pad * C_SM * 4     # narrow f32 output writeback
    )

    resident = pl.BlockSpec(memory_space=pltpu.MemorySpace.VMEM)

    out = pl.pallas_call(
        mlp_kernel,
        out_shape=jax.ShapeDtypeStruct((b_pad, C_SM), jnp.float32),
        grid=grid,
        in_specs=[
            pl.BlockSpec((tile_b, D), lambda i: (i, 0)),   # x: streamed tiles
            resident,   # w1  (bf16, whole array resident in VMEM)
            resident,   # b1  (f32)
            resident,   # w2  (bf16)
            resident,   # b2  (f32)
            resident,   # w3  (bf16)
            resident,   # b3  (f32; must stay f32 because of the -1e30 pad)
        ],
        out_specs=pl.BlockSpec((tile_b, C_SM), lambda i: (i, 0)),
        compiler_params=pltpu.CompilerParams(
            dimension_semantics=("parallel",),
            vmem_limit_bytes=vmem_limit,
        ),
        cost_estimate=pl.CostEstimate(
            flops=flops,
            transcendentals=b_pad * C_SM,
            bytes_accessed=bytes_accessed,
        ),
    )(x, w1, b1, w2, b2, w3, b3)

    return out[:B, :output_dim]


def init_params(key, input_dim, hidden_dim1=128, hidden_dim2=64, output_dim=2):
    """PyTorch-style init: U(-1/sqrt(fan_in), 1/sqrt(fan_in)); weights stored [in, out]."""
    def linear(k, fan_in, fan_out):
        kw, kb = jax.random.split(k)
        bound = 1.0 / jnp.sqrt(jnp.float32(fan_in))
        w = jax.random.uniform(kw, (fan_in, fan_out), jnp.float32, -bound, bound)
        b = jax.random.uniform(kb, (1, fan_out), jnp.float32, -bound, bound)
        return w, b

    k1, k2, k3 = jax.random.split(key, 3)
    w1, b1 = linear(k1, input_dim, hidden_dim1)
    w2, b2 = linear(k2, hidden_dim1, hidden_dim2)
    w3, b3 = linear(k3, hidden_dim2, output_dim)
    return (w1, b1, w2, b2, w3, b3)


def pad_params_for_kernel(params):
    """Pad hidden2/class dims to 128 lanes; cast matmul weights to bf16 (done once).

    Note: kernel requires hidden_dim1 == 128, hidden_dim2 <= 128 and
    output_dim <= C_SM (=8). Biases stay f32 (padded class lanes use -1e30,
    which would overflow in bf16).
    """
    w1, b1, w2, b2, w3, b3 = params
    h2 = w2.shape[1]
    c = w3.shape[1]
    assert w1.shape[1] == H1 and h2 <= H2_PAD and c <= C_SM

    w2p = jnp.pad(w2, ((0, 0), (0, H2_PAD - h2)))             # zero columns
    b2p = jnp.pad(b2, ((0, 0), (0, H2_PAD - h2)))             # zero bias -> ReLU(0)=0
    w3p = jnp.pad(w3, ((0, H2_PAD - h2), (0, C_MM - c)))      # zero rows/cols
    b3p = jnp.pad(b3, ((0, 0), (0, C_MM - c)), constant_values=NEG_BIG)

    return (w1.astype(jnp.bfloat16), b1,
            w2p.astype(jnp.bfloat16), b2p,
            w3p.astype(jnp.bfloat16), b3p)


def mlp_reference(x, params):
    """Pure-JAX f32 reference (unpadded) for correctness checking."""
    w1, b1, w2, b2, w3, b3 = params
    h1 = jnp.maximum(x @ w1 + b1, 0.0)
    h2 = jnp.maximum(h1 @ w2 + b2, 0.0)
    return jax.nn.softmax(h2 @ w3 + b3, axis=1)


if __name__ == "__main__":
    key = jax.random.PRNGKey(0)
    k_x, k_p = jax.random.split(key)

    batch = 8
    input_dim = 32

    x = jax.random.normal(k_x, (batch, input_dim), dtype=jnp.float32)
    params = init_params(k_p, input_dim, hidden_dim1=128, hidden_dim2=64, output_dim=2)
    kernel_params = pad_params_for_kernel(params)

    out = mlp_classifier_forward(x, kernel_params, output_dim=2)
    out = jax.block_until_ready(out)

    # Sanity: shape, softmax rows sum to 1 (exact divide), and agreement with
    # the f32 reference (bf16 MXU matmuls -> loosened tolerance).
    assert out.shape == (batch, 2)
    assert bool(jnp.all(jnp.abs(jnp.sum(out, axis=1) - 1.0) < 1e-3))
    ref = mlp_reference(x, params)
    assert bool(jnp.allclose(out, ref, atol=2e-2, rtol=2e-2))

    print("KERNEL_OK")
</pallas_src>

<mosaic_0001>
module attributes {stable_mosaic.version = 11 : i64} {
  func.func @mlp_kernel(%arg0: i32, %arg1: memref<8x32xf32, #tpu.memory_space<vmem>>, %arg2: memref<32x128xbf16, #tpu.memory_space<vmem>>, %arg3: memref<1x128xf32, #tpu.memory_space<vmem>>, %arg4: memref<128x128xbf16, #tpu.memory_space<vmem>>, %arg5: memref<1x128xf32, #tpu.memory_space<vmem>>, %arg6: memref<128x128xbf16, #tpu.memory_space<vmem>>, %arg7: memref<1x128xf32, #tpu.memory_space<vmem>>, %arg8: memref<8x8xf32, #tpu.memory_space<vmem>>) attributes {dimension_semantics = [#tpu.dimension_semantics<parallel>], iteration_bounds = array<i64: 1>, scalar_prefetch = 0 : i64, scratch_operands = 0 : i64, tpu.core_type = #tpu.core_type<tc>, window_params = [{transform_indices = @transform_0, window_bounds = array<i64: 8, 32>}, {pipeline_mode = #tpu.pipeline_mode<synchronous>, transform_indices = @transform_1, window_bounds = array<i64: 32, 128>}, {pipeline_mode = #tpu.pipeline_mode<synchronous>, transform_indices = @transform_2, window_bounds = array<i64: 1, 128>}, {pipeline_mode = #tpu.pipeline_mode<synchronous>, transform_indices = @transform_3, window_bounds = array<i64: 128, 128>}, {pipeline_mode = #tpu.pipeline_mode<synchronous>, transform_indices = @transform_4, window_bounds = array<i64: 1, 128>}, {pipeline_mode = #tpu.pipeline_mode<synchronous>, transform_indices = @transform_5, window_bounds = array<i64: 128, 128>}, {pipeline_mode = #tpu.pipeline_mode<synchronous>, transform_indices = @transform_6, window_bounds = array<i64: 1, 128>}, {transform_indices = @transform_7, window_bounds = array<i64: 8, 8>}]} {
    %c0 = arith.constant 0 : index
    %c0_0 = arith.constant 0 : index
    %0 = vector.load %arg1[%c0, %c0_0] : memref<8x32xf32, #tpu.memory_space<vmem>>, vector<8x32xf32>
    %1 = arith.truncf %0 : vector<8x32xf32> to vector<8x32xbf16>
    %c0_1 = arith.constant 0 : index
    %c0_2 = arith.constant 0 : index
    %2 = vector.load %arg2[%c0_1, %c0_2] : memref<32x128xbf16, #tpu.memory_space<vmem>>, vector<32x128xbf16>
    %cst = arith.constant dense<0.000000e+00> : vector<8x128xf32>
    %3 = tpu.matmul %1, %2, %cst {dimension_numbers = #tpu.dot_dimension_numbers<[1], [0], [0], [1], [0, 0, 1, 1], [], []>} : vector<8x32xbf16>, vector<32x128xbf16>, vector<8x128xf32> -> vector<8x128xf32>
    %c0_3 = arith.constant 0 : index
    %c0_4 = arith.constant 0 : index
    %4 = vector.load %arg3[%c0_3, %c0_4] : memref<1x128xf32, #tpu.memory_space<vmem>>, vector<1x128xf32>
    %5 = vector.broadcast %4 : vector<1x128xf32> to vector<8x128xf32>
    %6 = arith.addf %3, %5 : vector<8x128xf32>
    %cst_5 = arith.constant 0.000000e+00 : f32
    %7 = vector.broadcast %cst_5 : f32 to vector<8x128xf32>
    %8 = arith.maximumf %6, %7 : vector<8x128xf32>
    %9 = arith.truncf %8 : vector<8x128xf32> to vector<8x128xbf16>
    %c0_6 = arith.constant 0 : index
    %c0_7 = arith.constant 0 : index
    %10 = vector.load %arg4[%c0_6, %c0_7] : memref<128x128xbf16, #tpu.memory_space<vmem>>, vector<128x128xbf16>
    %cst_8 = arith.constant dense<0.000000e+00> : vector<8x128xf32>
    %11 = tpu.matmul %9, %10, %cst_8 {dimension_numbers = #tpu.dot_dimension_numbers<[1], [0], [0], [1], [0, 0, 1, 1], [], []>} : vector<8x128xbf16>, vector<128x128xbf16>, vector<8x128xf32> -> vector<8x128xf32>
    %c0_9 = arith.constant 0 : index
    %c0_10 = arith.constant 0 : index
    %12 = vector.load %arg5[%c0_9, %c0_10] : memref<1x128xf32, #tpu.memory_space<vmem>>, vector<1x128xf32>
    %13 = vector.broadcast %12 : vector<1x128xf32> to vector<8x128xf32>
    %14 = arith.addf %11, %13 : vector<8x128xf32>
    %cst_11 = arith.constant 0.000000e+00 : f32
    %15 = vector.broadcast %cst_11 : f32 to vector<8x128xf32>
    %16 = arith.maximumf %14, %15 : vector<8x128xf32>
    %17 = arith.truncf %16 : vector<8x128xf32> to vector<8x128xbf16>
    %c0_12 = arith.constant 0 : index
    %c0_13 = arith.constant 0 : index
    %18 = vector.load %arg6[%c0_12, %c0_13] : memref<128x128xbf16, #tpu.memory_space<vmem>>, vector<128x128xbf16>
    %cst_14 = arith.constant dense<0.000000e+00> : vector<8x128xf32>
    %19 = tpu.matmul %17, %18, %cst_14 {dimension_numbers = #tpu.dot_dimension_numbers<[1], [0], [0], [1], [0, 0, 1, 1], [], []>} : vector<8x128xbf16>, vector<128x128xbf16>, vector<8x128xf32> -> vector<8x128xf32>
    %c0_15 = arith.constant 0 : index
    %c0_16 = arith.constant 0 : index
    %20 = vector.load %arg7[%c0_15, %c0_16] : memref<1x128xf32, #tpu.memory_space<vmem>>, vector<1x128xf32>
    %21 = vector.broadcast %20 : vector<1x128xf32> to vector<8x128xf32>
    %22 = arith.addf %19, %21 : vector<8x128xf32>
    %23 = vector.extract_strided_slice %22 {offsets = [0, 0], sizes = [8, 8], strides = [1, 1]} : vector<8x128xf32> to vector<8x8xf32>
    %cst_17 = arith.constant dense<0xFF800000> : vector<8xf32>
    %24 = vector.multi_reduction <maximumf>, %23, %cst_17 [1] : vector<8x8xf32> to vector<8xf32>
    %25 = vector.shape_cast %24 : vector<8xf32> to vector<8x1xf32>
    %26 = vector.broadcast %25 : vector<8x1xf32> to vector<8x8xf32>
    %27 = arith.subf %23, %26 : vector<8x8xf32>
    %28 = math.exp %27 : vector<8x8xf32>
    %cst_18 = arith.constant dense<0.000000e+00> : vector<8xf32>
    %29 = vector.multi_reduction <add>, %28, %cst_18 [1] : vector<8x8xf32> to vector<8xf32>
    %30 = vector.shape_cast %29 : vector<8xf32> to vector<8x1xf32>
    %31 = vector.broadcast %30 : vector<8x1xf32> to vector<8x8xf32>
    %32 = arith.divf %28, %31 : vector<8x8xf32>
    %c0_19 = arith.constant 0 : index
    %c0_20 = arith.constant 0 : index
    %33 = vector.load %arg8[%c0_19, %c0_20] : memref<8x8xf32, #tpu.memory_space<vmem>>, vector<8x8xf32>
    tpu.vector_store %arg8[%c0_19, %c0_20], %32 {strides = array<i32>} : memref<8x8xf32, #tpu.memory_space<vmem>>, vector<8x8xf32>,
    return
  }
  func.func @transform_0(%arg0: i32) -> (i32, i32) {
    %c0_i32 = arith.constant 0 : i32
    %c0_i32_0 = arith.constant 0 : i32
    return %arg0, %c0_i32 : i32, i32
  }
  func.func @transform_1(%arg0: i32) -> (i32, i32) {
    %c0_i32 = arith.constant 0 : i32
    %c0_i32_0 = arith.constant 0 : i32
    %c0_i32_1 = arith.constant 0 : i32
    return %c0_i32, %c0_i32_0 : i32, i32
  }
  func.func @transform_2(%arg0: i32) -> (i32, i32) {
    %c0_i32 = arith.constant 0 : i32
    %c0_i32_0 = arith.constant 0 : i32
    %c0_i32_1 = arith.constant 0 : i32
    return %c0_i32, %c0_i32_0 : i32, i32
  }
  func.func @transform_3(%arg0: i32) -> (i32, i32) {
    %c0_i32 = arith.constant 0 : i32
    %c0_i32_0 = arith.constant 0 : i32
    %c0_i32_1 = arith.constant 0 : i32
    return %c0_i32, %c0_i32_0 : i32, i32
  }
  func.func @transform_4(%arg0: i32) -> (i32, i32) {
    %c0_i32 = arith.constant 0 : i32
    %c0_i32_0 = arith.constant 0 : i32
    %c0_i32_1 = arith.constant 0 : i32
    return %c0_i32, %c0_i32_0 : i32, i32
  }
  func.func @transform_5(%arg0: i32) -> (i32, i32) {
    %c0_i32 = arith.constant 0 : i32
    %c0_i32_0 = arith.constant 0 : i32
    %c0_i32_1 = arith.constant 0 : i32
    return %c0_i32, %c0_i32_0 : i32, i32
  }
  func.func @transform_6(%arg0: i32) -> (i32, i32) {
    %c0_i32 = arith.constant 0 : i32
    %c0_i32_0 = arith.constant 0 : i32
    %c0_i32_1 = arith.constant 0 : i32
    return %c0_i32, %c0_i32_0 : i32, i32
  }
  func.func @transform_7(%arg0: i32) -> (i32, i32) {
    %c0_i32 = arith.constant 0 : i32
    %c0_i32_0 = arith.constant 0 : i32
    return %arg0, %c0_i32 : i32, i32
  }
}

</mosaic_0001>

<bundles_post_ra>
// kernel: tpu_custom_call.1
= control target key start
LH: loop header
LB: loop body
LE: loop exit
PB: predicated region body
PF: predicated region fallthrough
CT: control target
= control target key end

     0   :  { %12 = vsyncpa [#allocation3], 0  ;;  %s646_s0 = inlined_call_operand.hbm [shape: f32[8,32], index: 0, kind: input, shape index: {}]   ;;  %s647_s1 = inlined_call_operand.hbm [shape: bf16[32,128], index: 1, kind: input, shape index: {}]   ;;  %s648_s2 = inlined_call_operand.vmem [shape: f32[1,128], index: 2, kind: input, shape index: {}]   ;;  %s649_s3 = inlined_call_operand.hbm [shape: bf16[128,128], index: 3, kind: input, shape index: {}]   ;;  %s650_s4 = inlined_call_operand.vmem [shape: f32[1,128], index: 4, kind: input, shape index: {}]   ;;  %s651_s5 = inlined_call_operand.hbm [shape: bf16[128,128], index: 5, kind: input, shape index: {}]   ;;  %s652_s6 = inlined_call_operand.vmem [shape: f32[1,128], index: 6, kind: input, shape index: {}]   ;;  %s653_s7 = inlined_call_operand.hbm [shape: f32[8,8], index: 7, kind: output, shape index: {}]  }
   0x1   :  { %13 = vsyncpa [#allocation6], 0 }
   0x2   :  { %14 = vsyncpa [#allocation9], 0  ;;  %s31_s26 = sshll.u32 %s647_s1, 4  ;;  %s32_s26 = int_to_ptr.hbm [resolvable:$true] %s31_s26 }
   0x3   :  { %15 = vsyncpa [#allocation4], 0  ;;  %s572_s27 = smov [#allocation5]   ;;  %s21_s8 = sshll.u32 %s646_s0, 4  ;;  %s22_s8 = int_to_ptr.hbm [resolvable:$true] %s21_s8 }
   0x4   :  { %s33_s28 = sshll.u32 %s572_s27, 4  ;;  %s573_s9 = smov 64   ;;  %s34_s28 = int_to_ptr.vmem [resolvable:$true] %s33_s28 }
   0x5   :  { %s574_s10 = smov 4   ;;  %s575_s11 = smov [#allocation2]  }
   0x6   :  { %39 = dma.hbm_to_vmem [thread:$0]  %s32_s26, 256, %s34_s28, [#allocation6], %s573_s9, %s573_s9, %s574_s10  }
   0x7   :  { %s23_s12 = sshll.u32 %s575_s11, 4  ;;  %s46_s15 = sshll.u32 %s649_s3, 4  ;;  %s24_s12 = int_to_ptr.vmem [resolvable:$true] %s23_s12  ;;  %s47_s15 = int_to_ptr.hbm [resolvable:$true] %s46_s15 }
   0x8   :  { %26 = dma.hbm_to_vmem [thread:$0]  %s22_s8, 128, %s24_s12, [#allocation3]  }
   0x9   :  { %s61_s17 = sshll.u32 %s651_s5, 4  ;;  %s576_s18 = smov [#allocation7]   ;;  %s62_s17 = int_to_ptr.hbm [resolvable:$true] %s61_s17 }
   0xa   :  { %s48_s19 = sshll.u32 %s576_s18, 4  ;;  %s577_s0 = smov [#allocation8]   ;;  %s49_s19 = int_to_ptr.vmem [resolvable:$true] %s48_s19 }
   0xb   :  { %54 = dma.hbm_to_vmem [thread:$0]  %s47_s15, 1024, %s49_s19, [#allocation6], %s573_s9, %s573_s9, %s574_s10  }
   0xc   :  { %s63_s20 = sshll.u32 %s577_s0, 4  ;;  %s64_s20 = int_to_ptr.vmem [resolvable:$true] %s63_s20 }
   0xd   :  { %69 = dma.hbm_to_vmem [thread:$0]  %s62_s17, 1024, %s64_s20, [#allocation9], %s573_s9, %s573_s9, %s574_s10  }
   0xe   :  { %564 = dma.done.wait [#allocation3], 128  }
   0xf   :  { %565 = vsyncadd [#allocation3], 4294967168 }
  0x10   :  { %566 = dma.done.wait [#allocation6], 1280  }
  0x11   :  { %567 = vsyncadd [#allocation6], 4294966016 }
  0x12   :  { %568 = dma.done.wait [#allocation9], 1024  }
  0x13   :  { %569 = vsyncadd [#allocation9], 4294966272  ;;  %v413_v0 = vld [vmem:[#allocation5 + $0x8] sm:$0xff]  ;;  %v412_v2 = vld [vmem:[#allocation5] sm:$0xff]  ;;  %vm111_vm0 = vcmask 261120   ;;  %vm294_vm1 = vcmask 64512  }
  0x14   :  { %v421_v1 = vld [vmem:[#allocation7 + $0x38] sm:$0xff]  ;;  %121 = vmatpush.bf16.msra.mxu0 %v413_v0  ;;  %v89_v3 = vld [vmem:[#allocation2] sm:$0xff]  ;;  %v420_v4 = vld [vmem:[#allocation7 + $0x30] sm:$0xff]  ;;  %s327_s26 = sshll.u32 %s653_s7, 4  ;;  %s328_s26 = int_to_ptr.hbm [resolvable:$true] %s327_s26 }
  0x15   :  { %198 = vmatpush.bf16.msra.mxu1 %v421_v1  ;;  %v90_v5 = vpack.c.bf16 %v89_v3, %v89_v3  ;;  %v419_v6 = vld [vmem:[#allocation7 + $0x28] sm:$0xff]  ;;  %v418_v7 = vld [vmem:[#allocation7 + $0x20] sm:$0xff]  ;;  %v417_v8 = vld [vmem:[#allocation7 + $0x18] sm:$0xff] }
  0x16   :  { %v416_v9 = vld [vmem:[#allocation7 + $0x10] sm:$0xff]  ;;  %v415_v10 = vld [vmem:[#allocation7 + $0x8] sm:$0xff]  ;;  %v414_v11 = vld [vmem:[#allocation7] sm:$0xff] }
  0x17   :  { %v429_v12 = vld [vmem:[#allocation8 + $0x38] sm:$0xff]  ;;  %v428_v13 = vld [vmem:[#allocation8 + $0x30] sm:$0xff]  ;;  %v427_v14 = vld [vmem:[#allocation8 + $0x28] sm:$0xff] }
  0x18   :  { %122 = vmatpush.bf16.msra.mxu0 %v412_v2  ;;  %281 = vmatpush.bf16.msra.mxu2 %v429_v12  ;;  %v426_v15 = vld [vmem:[#allocation8 + $0x20] sm:$0xff]  ;;  %v425_v16 = vld [vmem:[#allocation8 + $0x18] sm:$0xff]  ;;  %v424_v17 = vld [vmem:[#allocation8 + $0x10] sm:$0xff] }
  0x19   :  { %199 = vmatpush.bf16.msra.mxu1 %v420_v4  ;;  %v437_v18 = vld [vmem:[%s648_s2] ss:$0 sm:$0xff]  ;;  %v422_v25 = vld [vmem:[#allocation8] sm:$0xff] }
  0x1a   :  { %v423_v24 = vld [vmem:[#allocation8 + $0x8] sm:$0xff] }
  0x1b   :  { %347 = vmatmul.msk.bf16.vlgmr.msra.gmra.mxu0 %vm111_vm0, %v90_v5  ;;  %v438_v26 = vld [vmem:[%s650_s4] ss:$0 sm:$0xff]  ;;  %s578_s4 = smov [#allocation10]  }
  0x1c   :  { %282 = vmatpush.bf16.msra.mxu2 %v428_v13  ;;  %v439_v32 = vld [vmem:[%s652_s6] ss:$0 sm:$0xff]  ;;  %s325_s6 = sshll.u32 %s578_s4, 4  ;;  %s326_s6 = int_to_ptr.vmem [resolvable:$true] %s325_s6 }
  0x1d   :  { %200 = vmatpush.bf16.msra.mxu1 %v419_v6 }
  0x20   :  { %283 = vmatpush.bf16.msra.mxu2 %v427_v14 }
  0x21   :  { %201 = vmatpush.bf16.msra.mxu1 %v418_v7 }
  0x24   :  { %284 = vmatpush.bf16.msra.mxu2 %v426_v15 }
  0x25   :  { %202 = vmatpush.bf16.msra.mxu1 %v417_v8 }
  0x28   :  { %285 = vmatpush.bf16.msra.mxu2 %v425_v16 }
  0x29   :  { %203 = vmatpush.bf16.msra.mxu1 %v416_v9 }
  0x2c   :  { %286 = vmatpush.bf16.msra.mxu2 %v424_v17 }
  0x2d   :  { %204 = vmatpush.bf16.msra.mxu1 %v415_v10 }
  0x30   :  { %287 = vmatpush.bf16.msra.mxu2 %v423_v24 }
  0x31   :  { %205 = vmatpush.bf16.msra.mxu1 %v414_v11 }
  0x34   :  { %288 = vmatpush.bf16.msra.mxu2 %v422_v25 }
  0x98   :  { %v124_v19 = vpop.f32.mrf.mxu0 }
  0x99   :  { %v125_v20 = vadd.f32 %v437_v18, %v124_v19 }
  0x9b   :  { %v128_v21 = vmax.f32 %v125_v20, 0.0 }
  0x9d   :  { %v129_v22 = vpack.c.bf16 %v128_v21, %v128_v21 }
  0x9f   :  { %206 = vmatmul.bf16.vlgmr.msra.gmra.mxu1 %v129_v22 }
  0xa0   :  { %v126_v23 = vpop.f32.mrf.mxu0 }
 0x11c   :  { %v207_v27 = vpop.f32.mrf.mxu1 }
 0x11d   :  { %v208_v28 = vadd.f32 %v438_v26, %v207_v27 }
 0x11f   :  { %v211_v29 = vmax.f32 %v208_v28, 0.0 }
 0x121   :  { %v212_v30 = vpack.c.bf16 %v211_v29, %v211_v29 }
 0x123   :  { %289 = vmatmul.bf16.vlgmr.msra.gmra.mxu2 %v212_v30 }
 0x124   :  { %v209_v31 = vpop.f32.mrf.mxu1 }
 0x1a6   :  { %v290_v33 = vpop.f32.mrf.mxu2 }
 0x1a7   :  { %v291_v34 = vadd.f32 %v439_v32, %v290_v33 }
 0x1a9   :  { %v295_v35 = vsel %vm294_vm1, %v291_v34, -inf }
 0x1aa   :  { %296 = vmax.xlane.f32.xlu0 %v295_v35 }
 0x1ae   :  { %v292_v36 = vpop.f32.mrf.mxu2 }
 0x21d   :  { %v297_v37 = vpop.xlane.xlu0 %296 }
 0x21e   :  { %v298_v38 = vsub.f32 %v291_v34, %v297_v37 }
 0x220   :  { %v299_v39 = vmul.f32 1.442695, %v298_v38 }
 0x222   :  { %440 = vpow2.f32 %v299_v39 }
 0x228   :  { %v441_v40 = vpop.eup %440 }
 0x229   :  { %v301_v41 = vsel %vm294_vm1, %v441_v40, 0.0 }
 0x22a   :  { %302 = vadd.xlane.f32.xlu0 %v301_v41 }
 0x29d   :  { %v303_v42 = vpop.xlane.xlu0 %302 }
 0x29e   :  { %442 = vrcp.f32 %v303_v42  ;;  %v315_v46 = vand.u32 2147483648, %v303_v42  ;;  %v313_v48 = vand.u32 2147483647, %v303_v42  ;;  %vm309_vm3 = vweird.f32 %v303_v42 }
 0x2a0   :  { %v316_v50 = vor.u32 1.1754944e-38, %v315_v46  ;;  %vm314_vm5 = vcmp.eq.f32.partialorder %v313_v48, 8.507059e+37 }
 0x2a4   :  { %v443_v43 = vpop.eup %442 }
 0x2a5   :  { %v305_v44 = vmul.f32 %v443_v43, %v303_v42  ;;  %vm310_vm2 = vweird.f32 %v443_v43 }
 0x2a6   :  { %vm311_vm4 = vmor %vm309_vm3, %vm310_vm2 }
 0x2a7   :  { %v306_v45 = vsub.f32 1.0, %v305_v44 }
 0x2a9   :  { %v307_v47 = vmul.f32 %v443_v43, %v306_v45 }
 0x2ab   :  { %v308_v49 = vadd.f32 %v443_v43, %v307_v47 }
 0x2ad   :  { %v312_v51 = vsel %vm311_vm4, %v443_v43, %v308_v49 }
 0x2ae   :  { %v317_v52 = vsel %vm314_vm5, %v316_v50, %v312_v51 }
 0x2af   :  { %v318_v53 = vmul.f32 %v441_v40, %v317_v52 }
 0x2b1   :  { %319 = vst.msk [vmem:[#allocation10] sm:$0xff] %vm294_vm1, %v318_v53 }
 0x2b2   :  { %330 = dma.vmem_to_hbm [thread:$0]  %s326_s6, 128, %s328_s26, [#allocation4]  }
 0x2b3   :  { %570 = dma.done.wait [#allocation4], 128  }
 0x2b4   :  { %571 = vsyncadd [#allocation4], 4294967168 }
 0x2b5   :  { %335 = vsyncpa [#allocation3], 1 }
 0x2b6   :  { %336 = vsyncpa [#allocation6], 1 }
 0x2b7   :  { %337 = vsyncpa [#allocation9], 1 }
 0x2b8   :  { %338 = vsyncpa [#allocation4], 1 }

</bundles_post_ra>
